<compile_context>
chip_gen: v6e
topology: v6e:2x2x1
jax: 0.10.0
libtpu: 0.0.40
codegen_flags: <defaults>
</compile_context>

<pallas_src>
import functools

import jax
import jax.numpy as jnp
from jax import lax
from jax.experimental import pallas as pl
from jax.experimental.pallas import tpu as pltpu

_STAGE_CHANNELS = (64, 128, 256, 512, 512, 512)


# ----------------------------- Pallas kernel ------------------------------- #
def _pool_conv_kernel(f_ref, w_ref, b_ref, o_ref, sum_ref, max_ref, *,
                      inv_hw, hw_valid, hw_tile, c_in, fold):
    """Running GAP/GMP over spatial tiles; 1x1 conv + ReLU in the epilogue.

    f_ref  : (hw_tile, C*fold)  bf16/f32 feature tile (batch dim squeezed)
    w_ref  : (2*C, Cout)        f32 1x1-conv weight (transposed to (Cin, Cout))
    b_ref  : (1, Cout)          f32 bias
    o_ref  : (1, Cout)          style code for this batch element
    sum_ref/max_ref : (1, C*fold) f32 running accumulators (scratch)
    """
    k = pl.program_id(1)

    @pl.when(k == 0)
    def _():
        sum_ref[...] = jnp.zeros_like(sum_ref)
        max_ref[...] = jnp.full_like(max_ref, -jnp.inf)

    f = f_ref[...].astype(jnp.float32)                         # (hw_tile, Cf)
    # Mask rows beyond the true spatial extent (remainder tile): 0 for the sum
    # path, -inf for the max path.  Also guards against OOB garbage/NaNs.
    row = lax.broadcasted_iota(jnp.int32, f.shape, 0) + k * hw_tile
    valid = row < hw_valid
    sum_ref[...] = sum_ref[...] + jnp.sum(
        jnp.where(valid, f, 0.0), axis=0, keepdims=True)
    max_ref[...] = jnp.maximum(
        max_ref[...],
        jnp.max(jnp.where(valid, f, -jnp.inf), axis=0, keepdims=True))

    @pl.when(k == pl.num_programs(1) - 1)
    def _():
        s = sum_ref[...]                                       # (1, Cf)
        m = max_ref[...]
        # Undo the lane-density fold: columns [fi*C:(fi+1)*C] hold partials.
        gap = s[:, 0:c_in]
        gmp = m[:, 0:c_in]
        for fi in range(1, fold):
            gap = gap + s[:, fi * c_in:(fi + 1) * c_in]
            gmp = jnp.maximum(gmp, m[:, fi * c_in:(fi + 1) * c_in])
        gap = gap * inv_hw                                     # mean over H*W

        # cat([gap, gmp], channel) @ W  ==  gap @ W[:C] + gmp @ W[C:]
        w_avg = w_ref[0:c_in, :]
        w_max = w_ref[c_in:2 * c_in, :]
        y = (jnp.dot(gap, w_avg, preferred_element_type=jnp.float32)
             + jnp.dot(gmp, w_max, preferred_element_type=jnp.float32)
             + b_ref[...])                                     # (1, Cout)
        o_ref[...] = jnp.maximum(y, 0.0).astype(o_ref.dtype)   # ReLU


def style_code(feat_nhwc, w, b, *, feat_dtype=jnp.bfloat16):
    """GAP + GMP + 1x1 conv + ReLU for one feature map, in one pallas_call."""
    B, H, W, C = feat_nhwc.shape
    Cout = w.shape[1]
    hw = H * W

    # Lane-density fold for narrow-channel stages (C < 128): view (HW, C) as
    # (HW/f, C*f) so DMA / VPU work is lane-dense; folded back in the epilogue.
    fold = 1
    if C < 128 and 128 % C == 0 and hw % (128 // C) == 0:
        fold = 128 // C
    hw_f = hw // fold
    c_f = C * fold

    f = feat_nhwc.astype(feat_dtype).reshape(B, hw_f, c_f)
    w = w.astype(jnp.float32)
    b2 = b.reshape(1, Cout).astype(jnp.float32)

    # Spatial tile: aim for ~1 MiB per feature buffer (85%+ of HBM roofline per
    # measured data), multiple of 8 sublanes, clamped to the full extent.
    itemsize = jnp.dtype(feat_dtype).itemsize
    tile_rows = max(8, ((1 << 20) // (c_f * itemsize)) // 8 * 8)
    hw_tile = hw_f if hw_f <= tile_rows else tile_rows
    n_hw = pl.cdiv(hw_f, hw_tile)

    kernel = functools.partial(
        _pool_conv_kernel, inv_hw=1.0 / hw, hw_valid=hw_f,
        hw_tile=hw_tile, c_in=C, fold=fold)

    # TODO(synk): on v7x with B == 1 the second TensorCore idles; splitting the
    # spatial axis across cores would need a cross-core partial-reduce combine.
    out = pl.pallas_call(
        kernel,
        out_shape=jax.ShapeDtypeStruct((B, 1, Cout), jnp.float32),
        grid_spec=pltpu.PrefetchScalarGridSpec(
            num_scalar_prefetch=0,
            grid=(B, n_hw),
            in_specs=[
                pl.BlockSpec((pl.Squeezed(), hw_tile, c_f),
                             lambda i, k: (i, k, 0)),
                # constant block index -> weight/bias fetched once, kept resident
                pl.BlockSpec((2 * C, Cout), lambda i, k: (0, 0)),
                pl.BlockSpec((1, Cout), lambda i, k: (0, 0)),
            ],
            out_specs=pl.BlockSpec((pl.Squeezed(), 1, Cout),
                                   lambda i, k: (i, 0, 0)),
            scratch_shapes=[pltpu.VMEM((1, c_f), jnp.float32),
                            pltpu.VMEM((1, c_f), jnp.float32)],
        ),
        compiler_params=pltpu.CompilerParams(
            dimension_semantics=("parallel", "arbitrary"),
            vmem_limit_bytes=32 * 1024 * 1024),
    )(f, w, b2)
    # match PyTorch output shape (B, Cout, 1, 1) in NCHW
    return out.reshape(B, Cout, 1, 1)


# --------------------------- parameters (glue) ------------------------------ #
def init_params(key):
    params = {}
    keys = jax.random.split(key, 16)

    # TODO(synk): the real external VGG `encoder` passed to __init__ is not part
    # of this module's source; replaced by a deterministic synthetic conv stack.
    enc = []
    cin = 3
    for i, cout in enumerate(_STAGE_CHANNELS):
        wk, bk = jax.random.split(keys[i])
        fan_in = 3 * 3 * cin
        w = jax.random.normal(wk, (3, 3, cin, cout), jnp.float32) * (0.2 / fan_in ** 0.5)
        b = jax.random.normal(bk, (cout,), jnp.float32) * 0.01
        enc.append((w, b))
        cin = cout
    params["encoder"] = enc

    # conv1x1_i : Conv2d(2*C_i -> C_i, kernel 1, bias). Stored as (Cin, Cout).
    conv1x1 = []
    for i, c in enumerate(_STAGE_CHANNELS):
        wk, bk = jax.random.split(keys[8 + i])
        cin2, cout2 = 2 * c, c
        w = jax.random.normal(wk, (cin2, cout2), jnp.float32) * (1.0 / cin2 ** 0.5)
        b = jax.random.normal(bk, (cout2,), jnp.float32) * 0.01
        conv1x1.append((w, b))
    params["conv1x1"] = conv1x1
    return params


def encode_with_intermediate(params, x_nhwc):
    """Synthetic encoder stand-in (plain JAX glue). Returns 6 feature maps."""
    feats = []
    h = x_nhwc
    for i, (w, b) in enumerate(params["encoder"]):
        stride = 1 if i == 0 else 2
        h = lax.conv_general_dilated(
            h, w, window_strides=(stride, stride), padding="SAME",
            dimension_numbers=("NHWC", "HWIO", "NHWC"))
        h = jax.nn.relu(h + b)
        feats.append(h)
    return feats


def style_extractor_forward(params, x_nchw, index):
    """Mirrors StyleExtractor.forward(input, index)."""
    x_nhwc = jnp.transpose(x_nchw, (0, 2, 3, 1))
    feats = encode_with_intermediate(params, x_nhwc)
    codes = []
    for s in index.split(","):
        i = int(s)
        w, b = params["conv1x1"][i]
        codes.append(style_code(feats[i], w, b))
    return codes


# --------------------------- pure-JAX reference ----------------------------- #
def reference_forward(params, x_nchw, index):
    x_nhwc = jnp.transpose(x_nchw, (0, 2, 3, 1))
    feats = encode_with_intermediate(params, x_nhwc)
    codes = []
    for s in index.split(","):
        i = int(s)
        w, b = params["conv1x1"][i]
        f = feats[i]
        gap = jnp.mean(f, axis=(1, 2))                       # (B, C)
        gmp = jnp.max(f, axis=(1, 2))                        # (B, C)
        code = jnp.concatenate([gap, gmp], axis=1)           # (B, 2C)
        y = jax.nn.relu(code @ w + b)                        # (B, Cout)
        codes.append(y.reshape(y.shape[0], y.shape[1], 1, 1))
    return codes


if __name__ == "__main__":
    key = jax.random.PRNGKey(0)
    pkey, xkey = jax.random.split(key)
    params = init_params(pkey)

    # Small deterministic input (NCHW like the PyTorch module expects).
    x = jax.random.normal(xkey, (2, 3, 32, 32), jnp.float32)
    index = "0,1,2,3,4,5"

    codes = style_extractor_forward(params, x, index)
    codes = [jax.block_until_ready(c) for c in codes]

    refs = reference_forward(params, x, index)
    for i, (c, r) in enumerate(zip(codes, refs)):
        assert c.shape == r.shape, (c.shape, r.shape)
        assert bool(jnp.all(jnp.isfinite(c))), f"non-finite values in code {i}"
        # Features are fed to the kernel in bf16 (reference is f32), so the
        # tolerance is loosened accordingly.
        assert jnp.allclose(c, r, atol=5e-3, rtol=2e-2), f"mismatch on code {i}"

    print("KERNEL_OK")
</pallas_src>

<mosaic_0001>
module attributes {stable_mosaic.version = 11 : i64} {
  func.func @_pool_conv_kernel(%arg0: i32, %arg1: i32, %arg2: memref<1x512x128xbf16, #tpu.memory_space<vmem>>, %arg3: memref<128x64xf32, #tpu.memory_space<vmem>>, %arg4: memref<1x64xf32, #tpu.memory_space<vmem>>, %arg5: memref<1x1x64xf32, #tpu.memory_space<vmem>>, %arg6: memref<1x128xf32, #tpu.memory_space<vmem>>, %arg7: memref<1x128xf32, #tpu.memory_space<vmem>>) attributes {dimension_semantics = [#tpu.dimension_semantics<parallel>, #tpu.dimension_semantics<arbitrary>], iteration_bounds = array<i64: 2, 1>, scalar_prefetch = 0 : i64, scratch_operands = 2 : i64, tpu.core_type = #tpu.core_type<tc>, window_params = [{transform_indices = @transform_0, window_bounds = array<i64: 1, 512, 128>}, {pipeline_mode = #tpu.pipeline_mode<synchronous>, transform_indices = @transform_1, window_bounds = array<i64: 128, 64>}, {pipeline_mode = #tpu.pipeline_mode<synchronous>, transform_indices = @transform_2, window_bounds = array<i64: 1, 64>}, {transform_indices = @transform_3, window_bounds = array<i64: 1, 1, 64>}]} {
    %c0_i32 = arith.constant 0 : i32
    %0 = arith.cmpi eq, %arg1, %c0_i32 : i32
    %1 = arith.extui %0 : i1 to i32
    %c0_i32_0 = arith.constant 0 : i32
    %2 = arith.cmpi ne, %1, %c0_i32_0 : i32
    scf.if %2 {
      %cst_17 = arith.constant 0.000000e+00 : f32
      %29 = vector.broadcast %cst_17 : f32 to vector<1x128xf32>
      %c0_18 = arith.constant 0 : index
      %c0_19 = arith.constant 0 : index
      %30 = vector.load %arg6[%c0_18, %c0_19] : memref<1x128xf32, #tpu.memory_space<vmem>>, vector<1x128xf32>
      tpu.vector_store %arg6[%c0_18, %c0_19], %29 {strides = array<i32>} : memref<1x128xf32, #tpu.memory_space<vmem>>, vector<1x128xf32>,
      %cst_20 = arith.constant 0xFF800000 : f32
      %31 = vector.broadcast %cst_20 : f32 to vector<1x128xf32>
      %c0_21 = arith.constant 0 : index
      %c0_22 = arith.constant 0 : index
      %32 = vector.load %arg7[%c0_21, %c0_22] : memref<1x128xf32, #tpu.memory_space<vmem>>, vector<1x128xf32>
      tpu.vector_store %arg7[%c0_21, %c0_22], %31 {strides = array<i32>} : memref<1x128xf32, #tpu.memory_space<vmem>>, vector<1x128xf32>,
    } else {
    }
    %c0 = arith.constant 0 : index
    %c0_1 = arith.constant 0 : index
    %c0_2 = arith.constant 0 : index
    %3 = vector.load %arg2[%c0, %c0_1, %c0_2] : memref<1x512x128xbf16, #tpu.memory_space<vmem>>, vector<1x512x128xbf16>
    %4 = vector.shape_cast %3 : vector<1x512x128xbf16> to vector<512x128xbf16>
    %5 = arith.extf %4 : vector<512x128xbf16> to vector<512x128xf32>
    %6 = tpu.iota {dimensions = array<i32: 0>} : vector<512x128xi32>
    %c512_i32 = arith.constant 512 : i32
    %7 = arith.muli %arg1, %c512_i32 : i32
    %8 = vector.broadcast %7 : i32 to vector<512x128xi32>
    %9 = arith.addi %6, %8 : vector<512x128xi32>
    %c512_i32_3 = arith.constant 512 : i32
    %10 = vector.broadcast %c512_i32_3 : i32 to vector<512x128xi32>
    %11 = arith.cmpi slt, %9, %10 : vector<512x128xi32>
    %c0_4 = arith.constant 0 : index
    %c0_5 = arith.constant 0 : index
    %12 = vector.load %arg6[%c0_4, %c0_5] : memref<1x128xf32, #tpu.memory_space<vmem>>, vector<1x128xf32>
    %cst = arith.constant 0.000000e+00 : f32
    %13 = vector.broadcast %cst : f32 to vector<512x128xf32>
    %14 = arith.select %11, %5, %13 : vector<512x128xi1>, vector<512x128xf32>
    %cst_6 = arith.constant dense<0.000000e+00> : vector<128xf32>
    %15 = vector.multi_reduction <add>, %14, %cst_6 [0] : vector<512x128xf32> to vector<128xf32>
    %16 = vector.shape_cast %15 : vector<128xf32> to vector<1x128xf32>
    %17 = arith.addf %12, %16 : vector<1x128xf32>
    %c0_7 = arith.constant 0 : index
    %c0_8 = arith.constant 0 : index
    %18 = vector.load %arg6[%c0_7, %c0_8] : memref<1x128xf32, #tpu.memory_space<vmem>>, vector<1x128xf32>
    tpu.vector_store %arg6[%c0_7, %c0_8], %17 {strides = array<i32>} : memref<1x128xf32, #tpu.memory_space<vmem>>, vector<1x128xf32>,
    %c0_9 = arith.constant 0 : index
    %c0_10 = arith.constant 0 : index
    %19 = vector.load %arg7[%c0_9, %c0_10] : memref<1x128xf32, #tpu.memory_space<vmem>>, vector<1x128xf32>
    %cst_11 = arith.constant 0xFF800000 : f32
    %20 = vector.broadcast %cst_11 : f32 to vector<512x128xf32>
    %21 = arith.select %11, %5, %20 : vector<512x128xi1>, vector<512x128xf32>
    %cst_12 = arith.constant dense<0xFF800000> : vector<128xf32>
    %22 = vector.multi_reduction <maximumf>, %21, %cst_12 [0] : vector<512x128xf32> to vector<128xf32>
    %23 = vector.shape_cast %22 : vector<128xf32> to vector<1x128xf32>
    %24 = arith.maximumf %19, %23 : vector<1x128xf32>
    %c0_13 = arith.constant 0 : index
    %c0_14 = arith.constant 0 : index
    %25 = vector.load %arg7[%c0_13, %c0_14] : memref<1x128xf32, #tpu.memory_space<vmem>>, vector<1x128xf32>
    tpu.vector_store %arg7[%c0_13, %c0_14], %24 {strides = array<i32>} : memref<1x128xf32, #tpu.memory_space<vmem>>, vector<1x128xf32>,
    %c0_i32_15 = arith.constant 0 : i32
    %26 = arith.cmpi eq, %arg1, %c0_i32_15 : i32
    %27 = arith.extui %26 : i1 to i32
    %c0_i32_16 = arith.constant 0 : i32
    %28 = arith.cmpi ne, %27, %c0_i32_16 : i32
    scf.if %28 {
      %c0_17 = arith.constant 0 : index
      %c0_18 = arith.constant 0 : index
      %29 = vector.load %arg6[%c0_17, %c0_18] : memref<1x128xf32, #tpu.memory_space<vmem>>, vector<1x128xf32>
      %c0_19 = arith.constant 0 : index
      %c0_20 = arith.constant 0 : index
      %30 = vector.load %arg7[%c0_19, %c0_20] : memref<1x128xf32, #tpu.memory_space<vmem>>, vector<1x128xf32>
      %31 = vector.extract_strided_slice %29 {offsets = [0, 0], sizes = [1, 64], strides = [1, 1]} : vector<1x128xf32> to vector<1x64xf32>
      %32 = vector.extract_strided_slice %30 {offsets = [0, 0], sizes = [1, 64], strides = [1, 1]} : vector<1x128xf32> to vector<1x64xf32>
      %33 = vector.extract_strided_slice %29 {offsets = [0, 64], sizes = [1, 64], strides = [1, 1]} : vector<1x128xf32> to vector<1x64xf32>
      %34 = arith.addf %31, %33 : vector<1x64xf32>
      %35 = vector.extract_strided_slice %30 {offsets = [0, 64], sizes = [1, 64], strides = [1, 1]} : vector<1x128xf32> to vector<1x64xf32>
      %36 = arith.maximumf %32, %35 : vector<1x64xf32>
      %cst_21 = arith.constant 9.765625E-4 : f32
      %37 = vector.broadcast %cst_21 : f32 to vector<1x64xf32>
      %38 = arith.mulf %34, %37 : vector<1x64xf32>
      %c0_22 = arith.constant 0 : index
      %c0_23 = arith.constant 0 : index
      %39 = vector.load %arg3[%c0_22, %c0_23] : memref<128x64xf32, #tpu.memory_space<vmem>>, vector<64x64xf32>
      %c64 = arith.constant 64 : index
      %c0_24 = arith.constant 0 : index
      %40 = vector.load %arg3[%c64, %c0_24] : memref<128x64xf32, #tpu.memory_space<vmem>>, vector<64x64xf32>
      %cst_25 = arith.constant dense<0.000000e+00> : vector<1x64xf32>
      %41 = tpu.matmul %38, %39, %cst_25 {dimension_numbers = #tpu.dot_dimension_numbers<[1], [0], [0], [1], [0, 0, 1, 1], [], []>} : vector<1x64xf32>, vector<64x64xf32>, vector<1x64xf32> -> vector<1x64xf32>
      %cst_26 = arith.constant dense<0.000000e+00> : vector<1x64xf32>
      %42 = tpu.matmul %36, %40, %cst_26 {dimension_numbers = #tpu.dot_dimension_numbers<[1], [0], [0], [1], [0, 0, 1, 1], [], []>} : vector<1x64xf32>, vector<64x64xf32>, vector<1x64xf32> -> vector<1x64xf32>
      %43 = arith.addf %41, %42 : vector<1x64xf32>
      %c0_27 = arith.constant 0 : index
      %c0_28 = arith.constant 0 : index
      %44 = vector.load %arg4[%c0_27, %c0_28] : memref<1x64xf32, #tpu.memory_space<vmem>>, vector<1x64xf32>
      %45 = arith.addf %43, %44 : vector<1x64xf32>
      %cst_29 = arith.constant 0.000000e+00 : f32
      %46 = vector.broadcast %cst_29 : f32 to vector<1x64xf32>
      %47 = arith.maximumf %45, %46 : vector<1x64xf32>
      %c0_30 = arith.constant 0 : index
      %c0_31 = arith.constant 0 : index
      %c0_32 = arith.constant 0 : index
      %48 = vector.load %arg5[%c0_30, %c0_31, %c0_32] : memref<1x1x64xf32, #tpu.memory_space<vmem>>, vector<1x1x64xf32>
      %49 = vector.shape_cast %48 : vector<1x1x64xf32> to vector<1x64xf32>
      %50 = vector.shape_cast %47 : vector<1x64xf32> to vector<1x1x64xf32>
      tpu.vector_store %arg5[%c0_30, %c0_31, %c0_32], %50 {strides = array<i32>} : memref<1x1x64xf32, #tpu.memory_space<vmem>>, vector<1x1x64xf32>,
    } else {
    }
    return
  }
  func.func @transform_0(%arg0: i32, %arg1: i32) -> (i32, i32, i32) {
    %c0_i32 = arith.constant 0 : i32
    %c0_i32_0 = arith.constant 0 : i32
    return %arg0, %arg1, %c0_i32 : i32, i32, i32
  }
  func.func @transform_1(%arg0: i32, %arg1: i32) -> (i32, i32) {
    %c0_i32 = arith.constant 0 : i32
    %c0_i32_0 = arith.constant 0 : i32
    %c0_i32_1 = arith.constant 0 : i32
    return %c0_i32, %c0_i32_0 : i32, i32
  }
  func.func @transform_2(%arg0: i32, %arg1: i32) -> (i32, i32) {
    %c0_i32 = arith.constant 0 : i32
    %c0_i32_0 = arith.constant 0 : i32
    %c0_i32_1 = arith.constant 0 : i32
    return %c0_i32, %c0_i32_0 : i32, i32
  }
  func.func @transform_3(%arg0: i32, %arg1: i32) -> (i32, i32, i32) {
    %c0_i32 = arith.constant 0 : i32
    %c0_i32_0 = arith.constant 0 : i32
    %c0_i32_1 = arith.constant 0 : i32
    return %arg0, %c0_i32, %c0_i32_0 : i32, i32, i32
  }
}

</mosaic_0001>

<bundles_post_ra>
// kernel: tpu_custom_call.1
= control target key start
LH: loop header
LB: loop body
LE: loop exit
PB: predicated region body
PF: predicated region fallthrough
CT: control target
= control target key end

     0   :  { %8 = vsyncpa [#allocation5], 0  ;;  %s1957_s0 = inlined_call_operand.hbm [shape: bf16[2,512,128], index: 0, kind: input, shape index: {}]   ;;  %s1958_s1 = inlined_call_operand.vmem [shape: f32[128,64], index: 1, kind: input, shape index: {}]   ;;  %s1959_s2 = inlined_call_operand.vmem [shape: f32[1,64], index: 2, kind: input, shape index: {}]   ;;  %s1960_s3 = inlined_call_operand.hbm [shape: f32[2,1,64], index: 3, kind: output, shape index: {}]  }
   0x1   :  { %10 = vsyncpa [#allocation5 + $0x1], 0 }
   0x2   :  { %11 = vsyncpa [#allocation6], 0 }
   0x3   :  { %13 = vsyncpa [#allocation6 + $0x1], 0  ;;  %s1516_s12 = smov 0   ;;  %s1518_s13 = smov 0  }
   0x4   :  { %s1520_s14 = smov 0   ;;  %s1522_s15 = smov 0  }
   0x5   :  { %s1524_s16 = smov 0   ;;  %s1526_s17 = smov 0  }
   0x6 LB: > { %s1080_s18 = sadd.s32 4294967295, %s1486_s17   ;;  %s1081_s19 = sadd.s32 4294967294, %s1486_s17   ;;  %s1486_s17 = sphi %s1526_s17, %s19_s17   ;;  %s1482_s16 = sphi %s1524_s16, %s1971_s16   ;;  %s1478_s15 = sphi %s1522_s15, %s1970_s15   ;;  %s1474_s14 = sphi %s1520_s14, %s1969_s14   ;;  %s1470_s13 = sphi %s1518_s13, %s1968_s13   ;;  %s1466_s12 = sphi %s1516_s12, %s1967_s12  }
   0x7   : > { %s31_s20 = sadd.s32 1, %s1482_s16  ;;  %s40_s21 = sadd.s32 1, %s1474_s14 }
   0x8   : > { %p33_p0 = scmp.ge.s32.totalorder %s31_s20, 2  ;;  %p47_p1 = scmp.ne.s32.totalorder %s1474_s14, %s1470_s13 }
   0x9   : > { %p48_p2 = scmp.eq.s32.totalorder %s1486_s17, 0  ;;  %p53_p3 = scmp.ne.s32.totalorder %s1470_s13, %s1466_s12 }
   0xa   : > { %s1973_s20 = smov (%p33_p0, %s31_s20), 0  ;;  %p54_p5 = scmp.eq.s32.totalorder %s1080_s18, 0 }
   0xb   : > { %p1557_p4 = por %p48_p2, %p47_p1  ;;  %s35_s23 = ssub.s32 %s1482_s16, %s1973_s20 }
   0xc   : > { %p119_p6 = scmp.eq.s32.totalorder %s1080_s18, 1  ;;  %p38_p7 = scmp.eq.s32.totalorder %s35_s23, 0 }
   0xd   : > { %p1563_p8 = por %p54_p5, %p53_p3  ;;  %p125_p10 = scmp.eq.s32.totalorder %s1081_s19, 1 }
   0xe   : > { %p1567_p9 = por %p119_p6, %p47_p1  ;;  %p1322_p13 = scmp.lt.s32.totalorder %s1486_s17, 2 }
   0xf   : > { %s1572_s26 = scalar_select %p38_p7, %s1474_s14, %s40_s21  }
  0x10   : > { %p1574_p11 = por %p125_p10, %p53_p3  ;;  %s151_s28 = sand.u32 1, %s1474_s14  }
  0x11   : > { %s1084_s29 = sshll.u32 %s151_s28, 8  ;;  %s1094_s30 = sshll.u32 %s1482_s16, 12 }
  0x12   : > { %s163_s6 = scalar_lea.hbm %s1957_s0, %s1094_s30  ;;  %s155_s7 = scalar_lea.vmem [#allocation4], %s1084_s29 }
  0x13   : > { %s164_s8 = sshll.u32 %s155_s7, 4  ;;  %p1587_p0 = pnand %p1322_p13, %p1557_p4  ;;  %s165_s8 = int_to_ptr.vmem [resolvable:$true] %s164_s8 }
  0x14   : > { %p1087_p1 = scmp.ge.s32.totalorder %s1486_s17, 1  ;;  %s152_s10 = scalar_lea.sflag [#allocation5], %s151_s28 }
  0x15   : > { %p1380_p2 = pneg %p1587_p0  ;;  %s1391_s11 = scalar_lea.vmem %s165_s8, 4096 }
  0x16   : > { %p1392_p3 = scmp.ne.s32.totalorder %s165_s8, %s1391_s11  ;;  %s1488_s18 = smov [#allocation4]  }
  0x17   : > { %s1396_s19 = sshll.u32 %s1488_s18, 4  ;;  %s1397_s19 = int_to_ptr.vmem [resolvable:$false] %s1396_s19 }
  0x18   : > { %p1394_p5 = pnand %p1392_p3, %p1380_p2  ;;  %s1398_s21 = scalar_lea.vmem %s1397_s19, 8192 }
  0x19   : > { %p1399_p7 = scmp.lt.s32.totalorder %s165_s8, %s1397_s19  ;;  %p1400_p10 = scmp.lt.s32.totalorder %s1398_s21, %s1391_s11 }
  0x1a   : > { %p1395_p6 = pneg %p1394_p5 }
  0x1b   : > { %p1401_p12 = por %p1400_p10, %p1399_p7 }
  0x1d   : > { %p1402_p4 = pnand %p1401_p12, %p1395_p6 }
  0x1f   : > { %1405 = shalt.err (!%p1402_p4)
}
  0x20   : > { %s1489_s22 = smov 64   ;;  %s1490_s23 = smov 4  }
  0x21   : > { %1317 = dma.hbm_to_vmem [thread:$0]  (!%p1587_p0), %s163_s6, 4096, %s165_s8, %s152_s10, %s1489_s22, %s1489_s22, %s1490_s23  }
  0x22   : > { %p172_p13 = scmp.lt.s32.totalorder %s1486_s17, 3 }
  0x24   : > { %p173_p2 = pnand %p1087_p1, %p172_p13 }
  0x25   : > { %s1600_s28 = sand.u32 (!%p173_p2), 1, %s1470_s13  }
  0x26   : > { %176 = sbr.rel (%p173_p2) target bundleno = 531 (0x213), region = 32  ;;  %s1088_s29 = sshll.u32 (!%p173_p2), %s1600_s28, 8 }
  0x27   : > { %s179_s30 = scalar_lea.sflag (!%p173_p2), [#allocation5], %s1600_s28  ;;  %s1604_s4 = scalar_lea.vmem (!%p173_p2), [#allocation4], %s1088_s29 }
  0x2b   : > { %1457 = dma.done.wait (%p1563_p8), %s179_s30, 4096  }
  0x2c   : > { %1459 = vsyncadd (%p1563_p8), %s179_s30, 4294963200  ;;  %v1491_v0 = vmov 0.0   ;;  %v1614_v1 = vld [vmem:[%s1604_s4 + $0x20] sm:$0xff]   ;;  %v1617_v2 = vld [vmem:[%s1604_s4 + $0x28] sm:$0xff]   ;;  %v1492_v52 = vmov -inf   ;;  %vm1493_vm0 = vmmov 0  }
  0x2d   : > { %209 = vst [vmem:[#allocation2] sm:$0x1] %v1491_v0  ;;  %1291 = vmatprep.subr.mxu1 %v1491_v0  ;;  %1272 = vmatprep.subr.mxu0 %v1491_v0  ;;  %v1113_v3 = vunpack.c.l.bf16 %v1614_v1  ;;  %v1114_v4 = vunpack.c.h.bf16 %v1614_v1  ;;  %v1117_v5 = vunpack.c.l.bf16 %v1617_v2  ;;  %v1623_v6 = vld [vmem:[%s1604_s4 + $0x30] sm:$0xff]   ;;  %v1118_v8 = vunpack.c.h.bf16 %v1617_v2  ;;  %v1634_v11 = vld [vmem:[%s1604_s4 + $0x38] sm:$0xff]   ;;  %v1096_v14 = vld [vmem:[%s1604_s4] sm:$0xff]   ;;  %s1494_s5 = smov 64  }
  0x2e   : > { %v1121_v10 = vunpack.c.l.bf16 %v1623_v6  ;;  %v1122_v13 = vunpack.c.h.bf16 %v1623_v6  ;;  %v1125_v16 = vunpack.c.l.bf16 %v1634_v11  ;;  %v1644_v17 = vld [vmem:[%s1604_s4 + $0x40] sm:$0xff]   ;;  %v1223_v18 = vld [vmem:[%s1604_s4 + $0x8] sm:$0xff]   ;;  %v1224_v19 = vld [vmem:[%s1604_s4 + $0x10] sm:$0xff]   ;;  %v1126_v21 = vunpack.c.h.bf16 %v1634_v11  ;;  %210 = vst [vmem:[#allocation3] sm:$0x1] %v1492_v52  ;;  %1307 = vmatprep.mubr.msk.f32.mxu1 %vm1493_vm0, %v1491_v0  ;;  %1288 = vmatprep.mubr.msk.f32.mxu0 %vm1493_vm0, %v1491_v0  ;;  %s1091_s8 = sshll.u32 %s1478_s15, 4 }
  0x2f   : > { %v742_v7 = vmax.f32 %v1114_v4, %v1113_v3  ;;  %v1097_v22 = vunpack.c.l.bf16 %v1096_v14  ;;  %v1098_v23 = vunpack.c.h.bf16 %v1096_v14  ;;  %v1225_v24 = vld [vmem:[%s1604_s4 + $0x18] sm:$0xff]   ;;  %v1129_v26 = vunpack.c.l.bf16 %v1644_v17  ;;  %v1656_v27 = vld [vmem:[%s1604_s4 + $0x48] sm:$0xff]   ;;  %v1671_v42 = vld [vmem:[%s1604_s4 + $0x50] sm:$0xff]   ;;  %s203_s9 = scalar_lea.vmem [#allocation7], %s1600_s28  ;;  %s1001_s18 = scalar_lea.hbm %s1960_s3, %s1091_s8 }
  0x30   : > { %v1101_v28 = vunpack.c.l.bf16 %v1223_v18  ;;  %v1102_v29 = vunpack.c.h.bf16 %v1223_v18  ;;  %v1105_v30 = vunpack.c.l.bf16 %v1224_v19  ;;  %v1106_v31 = vunpack.c.h.bf16 %v1224_v19  ;;  %v1682_v50 = vld [vmem:[%s1604_s4 + $0x58] sm:$0xff]   ;;  %v1691_v58 = vld [vmem:[%s1604_s4 + $0x60] sm:$0xff]   ;;  %v836_v6 = vld [vmem:[%s1958_s1 + $0x70] sm:$0xff]  ;;  %s1003_s10 = sshll.u32 %s203_s9, 4  ;;  %s991_s19 = scalar_lea.sflag [#allocation6], %s1600_s28  ;;  %s1004_s10 = int_to_ptr.vmem [resolvable:$true] %s1003_s10 }
  0x31   : > { %v746_v9 = vmax.f32 %v742_v7, %v1117_v5  ;;  %v1110_v32 = vunpack.c.h.bf16 %v1225_v24  ;;  %v1130_v34 = vunpack.c.h.bf16 %v1644_v17  ;;  %v1109_v35 = vunpack.c.l.bf16 %v1225_v24  ;;  %v1780_v11 = vld [vmem:[%s1604_s4 + $0x88] sm:$0xff]   ;;  %s1406_s21 = scalar_lea.vmem %s1004_s10, 16  ;;  %s1495_s22 = smov [#allocation7]  }
  0x32   : > { %v1133_v36 = vunpack.c.l.bf16 %v1656_v27  ;;  %v599_v37 = vadd.f32 %v1098_v23, %v1097_v22  ;;  %v1666_v40 = vmax.f32 %v1097_v22, %v1105_v30  ;;  %v1668_v41 = vmax.f32 %v1098_v23, %v1106_v31  ;;  %v1713_v22 = vld [vmem:[%s1604_s4 + $0x70] sm:$0xff]   ;;  %p1407_p8 = scmp.ne.s32.totalorder %s1004_s10, %s1406_s21  ;;  %s1410_s23 = sshll.u32 %s1495_s22, 4  ;;  %s1411_s23 = int_to_ptr.vmem [resolvable:$false] %s1410_s23 }
  0x33   : > { %v750_v12 = vmax.f32 %v746_v9, %v1118_v8  ;;  %v1664_v39 = vmax.f32 %v1102_v29, %v1110_v32  ;;  %v1673_v44 = vmax.f32 %v1101_v28, %v1109_v35  ;;  %v1134_v46 = vunpack.c.h.bf16 %v1656_v27  ;;  %v1700_v9 = vld [vmem:[%s1604_s4 + $0x68] sm:$0xff]   ;;  %s1412_s15 = scalar_lea.vmem %s1411_s23, 32  ;;  %p1413_p1 = scmp.lt.s32.totalorder %s1004_s10, %s1411_s23 }
  0x34   : > { %v600_v43 = vadd.f32 %v1101_v28, %v599_v37  ;;  %v1137_v49 = vunpack.c.l.bf16 %v1671_v42  ;;  %v1138_v54 = vunpack.c.h.bf16 %v1671_v42  ;;  %v1141_v57 = vunpack.c.l.bf16 %v1682_v50  ;;  %v1726_v28 = vld [vmem:[%s1604_s4 + $0x78] sm:$0xff]   ;;  %v827_v37 = vld [vmem:[%s1958_s1 + $0x28] sm:$0xff]  ;;  %p1408_p12 = pnand %p1407_p8, %p1567_p9  ;;  %p1414_p3 = scmp.lt.s32.totalorder %s1412_s15, %s1406_s21 }
  0x35   : > { %v754_v15 = vmax.f32 %v750_v12, %v1121_v10  ;;  %v1142_v61 = vunpack.c.h.bf16 %v1682_v50  ;;  %v1145_v7 = vunpack.c.l.bf16 %v1691_v58  ;;  %v1150_v24 = vunpack.c.h.bf16 %v1700_v9 }
  0x36   : > { %v601_v47 = vadd.f32 %v1102_v29, %v600_v43  ;;  %vm838_vm1 = vcmask 523264   ;;  %vm988_vm2 = vcmask 516096   ;;  %p1409_p0 = pneg %p1408_p12  ;;  %p1415_p5 = por %p1414_p3, %p1413_p1 }
  0x37   : > { %v758_v20 = vmax.f32 %v754_v15, %v1122_v13  ;;  %v1146_v15 = vunpack.c.h.bf16 %v1691_v58 }
  0x38   : > { %v602_v51 = vadd.f32 %v1105_v30, %v601_v47  ;;  %v1154_v30 = vunpack.c.h.bf16 %v1713_v22  ;;  %v826_v47 = vld [vmem:[%s1958_s1 + $0x20] sm:$0xff]  ;;  %p1416_p6 = pnand %p1415_p5, %p1409_p0 }
  0x39   : > { %v762_v25 = vmax.f32 %v758_v20, %v1125_v16  ;;  %v1149_v20 = vunpack.c.l.bf16 %v1700_v9 }
  0x3a   : > { %v603_v55 = vadd.f32 %v1106_v31, %v602_v51  ;;  %v837_v31 = vld [vmem:[%s1958_s1 + $0x78] sm:$0xff] }
  0x3b   : > { %v766_v33 = vmax.f32 %v762_v25, %v1126_v21  ;;  %1273 = vmatpush3.msra.mxu0 %v837_v31 }
  0x3c   : > { %v604_v59 = vadd.f32 %v1109_v35, %v603_v55  ;;  %1274 = vmatprep.subr.mxu0 %v1491_v0  ;;  %v833_v55 = vld [vmem:[%s1958_s1 + $0x58] sm:$0xff] }
  0x3d   : > { %v770_v38 = vmax.f32 %v766_v33, %v1129_v26  ;;  %v1157_v33 = vunpack.c.l.bf16 %v1726_v28  ;;  %1275 = vmatpush3.msra.mxu0 %v836_v6 }
  0x3e   : > { %v605_v62 = vadd.f32 %v1110_v32, %v604_v59  ;;  %1276 = vmatprep.subr.mxu0 %v1491_v0 }
  0x3f   : > { %v774_v45 = vmax.f32 %v770_v38, %v1130_v34  ;;  %v835_v38 = vld [vmem:[%s1958_s1 + $0x68] sm:$0xff] }
  0x40   : > { %v606_v12 = vadd.f32 %v1113_v3, %v605_v62  ;;  %1277 = vmatpush3.msra.mxu0 %v835_v38 }
  0x41   : > { %v778_v48 = vmax.f32 %v774_v45, %v1133_v36  ;;  %v1158_v45 = vunpack.c.h.bf16 %v1726_v28  ;;  %1278 = vmatprep.subr.mxu0 %v1491_v0 }
  0x42   : > { %v607_v18 = vadd.f32 %v1114_v4, %v606_v12  ;;  %v1153_v4 = vunpack.c.l.bf16 %v1713_v22  ;;  %v1806_v12 = vld [vmem:[%s1604_s4 + $0x90] sm:$0xff]  }
  0x43   : > { %v782_v53 = vmax.f32 %v778_v48, %v1134_v46  ;;  %v834_v48 = vld [vmem:[%s1958_s1 + $0x60] sm:$0xff] }
  0x44   : > { %v608_v23 = vadd.f32 %v1117_v5, %v607_v18  ;;  %1279 = vmatpush3.msra.mxu0 %v834_v48 }
  0x45   : > { %v786_v56 = vmax.f32 %v782_v53, %v1137_v49  ;;  %v825_v53 = vld [vmem:[%s1958_s1 + $0x18] sm:$0xff]  ;;  %1280 = vmatprep.subr.mxu0 %v1491_v0 }
  0x46   : > { %v609_v25 = vadd.f32 %v1118_v8, %v608_v23  ;;  %v829_v8 = vld [vmem:[%s1958_s1 + $0x38] sm:$0xff]  ;;  %1281 = vmatpush3.msra.mxu0 %v833_v55 }
  0x47   : > { %v790_v60 = vmax.f32 %v786_v56, %v1138_v54  ;;  %1292 = vmatpush3.msra.mxu1 %v829_v8  ;;  %1282 = vmatprep.subr.mxu0 %v1491_v0  ;;  %v1822_v23 = vld [vmem:[%s1604_s4 + $0x98] sm:$0xff]  }
  0x48   : > { %v610_v29 = vadd.f32 %v1121_v10, %v609_v25  ;;  %v828_v10 = vld [vmem:[%s1958_s1 + $0x30] sm:$0xff]  ;;  %1293 = vmatprep.subr.mxu1 %v1491_v0  ;;  %v1174_v31 = vunpack.c.h.bf16 %v1822_v23 }
  0x49   : > { %v794_v63 = vmax.f32 %v790_v60, %v1141_v57  ;;  %1294 = vmatpush3.msra.mxu1 %v828_v10  ;;  %v824_v60 = vld [vmem:[%s1958_s1 + $0x10] sm:$0xff] }
  0x4a   : > { %v611_v2 = vadd.f32 %v1122_v13, %v610_v29  ;;  %v1751_v13 = vld [vmem:[%s1604_s4 + $0x80] sm:$0xff]   ;;  %1295 = vmatprep.subr.mxu1 %v1491_v0  ;;  %v1173_v29 = vunpack.c.l.bf16 %v1822_v23 }
  0x4b   : > { %v739_v14 = vmax.f32 %v1142_v61, %v794_v63  ;;  %v1161_v52 = vunpack.c.l.bf16 %v1751_v13  ;;  %1296 = vmatpush3.msra.mxu1 %v827_v37  ;;  %v1162_v59 = vunpack.c.h.bf16 %v1751_v13  ;;  %v1165_v63 = vunpack.c.l.bf16 %v1780_v11 }
  0x4c   : > { %v612_v35 = vadd.f32 %v1125_v16, %v611_v2  ;;  %1297 = vmatprep.subr.mxu1 %v1491_v0 }
  0x4d   : > { %v740_v19 = vmax.f32 %v1145_v7, %v739_v14  ;;  %1298 = vmatpush3.msra.mxu1 %v826_v47  ;;  %v1166_v14 = vunpack.c.h.bf16 %v1780_v11 }
  0x4e   : > { %v613_v16 = vadd.f32 %v1126_v21, %v612_v35  ;;  %1299 = vmatprep.subr.mxu1 %v1491_v0 }
  0x4f   : > { %v741_v3 = vmax.f32 %v1146_v15, %v740_v19  ;;  %1300 = vmatpush3.msra.mxu1 %v825_v53 }
  0x50   : > { %v614_v21 = vadd.f32 %v1129_v26, %v613_v16  ;;  %1301 = vmatprep.subr.mxu1 %v1491_v0 }
  0x51   : > { %v743_v1 = vmax.f32 %v1149_v20, %v741_v3  ;;  %1302 = vmatpush3.msra.mxu1 %v824_v60 }
  0x52   : > { %v615_v26 = vadd.f32 %v1130_v34, %v614_v21  ;;  %1303 = vmatprep.subr.mxu1 %v1491_v0 }
  0x53   : > { %v744_v5 = vmax.f32 %v1150_v24, %v743_v1  ;;  %v1170_v1 = vunpack.c.h.bf16 %v1806_v12 }
  0x54   : > { %v616_v17 = vadd.f32 %v1133_v36, %v615_v26  ;;  %v1169_v36 = vunpack.c.l.bf16 %v1806_v12 }
  0x55   : > { %v745_v32 = vmax.f32 %v1153_v4, %v744_v5  ;;  %v1831_v5 = vld [vmem:[%s1604_s4 + $0xa0] sm:$0xff]  }
  0x56   : > { %v617_v18 = vadd.f32 %v1134_v46, %v616_v17  ;;  %v1177_v42 = vunpack.c.l.bf16 %v1831_v5  ;;  %v1178_v35 = vunpack.c.h.bf16 %v1831_v5 }
  0x57   : > { %v747_v43 = vmax.f32 %v1154_v30, %v745_v32 }
  0x58   : > { %v618_v3 = vadd.f32 %v1137_v49, %v617_v18 }
  0x59   : > { %v748_v51 = vmax.f32 %v1157_v33, %v747_v43 }
  0x5a   : > { %v619_v27 = vadd.f32 %v1138_v54, %v618_v3  ;;  %v1840_v54 = vld [vmem:[%s1604_s4 + $0xa8] sm:$0xff]  }
  0x5b   : > { %v749_v56 = vmax.f32 %v1158_v45, %v748_v51  ;;  %v1181_v50 = vunpack.c.l.bf16 %v1840_v54  ;;  %v1182_v16 = vunpack.c.h.bf16 %v1840_v54 }
  0x5c   : > { %v620_v2 = vadd.f32 %v1141_v57, %v619_v27 }
  0x5d   : > { %v751_v62 = vmax.f32 %v1161_v52, %v749_v56 }
  0x5e   : > { %v621_v49 = vadd.f32 %v1142_v61, %v620_v2  ;;  %v1849_v61 = vld [vmem:[%s1604_s4 + $0xb0] sm:$0xff]  }
  0x5f   : > { %v752_v34 = vmax.f32 %v1162_v59, %v751_v62  ;;  %v1185_v58 = vunpack.c.l.bf16 %v1849_v61  ;;  %v1186_v21 = vunpack.c.h.bf16 %v1849_v61 }
  0x60   : > { %v622_v32 = vadd.f32 %v1145_v7, %v621_v49  ;;  %v1250_v49 = vld [vmem:[%s1604_s4 + $0xe0] sm:$0xff]  }
  0x61   : > { %v753_v19 = vmax.f32 %v1165_v63, %v752_v34  ;;  %v1210_v61 = vunpack.c.h.bf16 %v1250_v49 }
  0x62   : > { %v623_v57 = vadd.f32 %v1146_v15, %v622_v32  ;;  %v1858_v15 = vld [vmem:[%s1604_s4 + $0xb8] sm:$0xff]  }
  0x63   : > { %v755_v25 = vmax.f32 %v1166_v14, %v753_v19  ;;  %v1189_v9 = vunpack.c.l.bf16 %v1858_v15  ;;  %v1190_v26 = vunpack.c.h.bf16 %v1858_v15  ;;  %v1248_v19 = vld [vmem:[%s1604_s4 + $0xd0] sm:$0xff]  }
  0x64   : > { %v624_v38 = vadd.f32 %v1149_v20, %v623_v57  ;;  %v1201_v27 = vunpack.c.l.bf16 %v1248_v19  ;;  %v1202_v2 = vunpack.c.h.bf16 %v1248_v19 }
  0x65   : > { %v756_v46 = vmax.f32 %v1169_v36, %v755_v25 }
  0x66   : > { %v625_v7 = vadd.f32 %v1150_v24, %v624_v38  ;;  %v1867_v24 = vld [vmem:[%s1604_s4 + $0xc0] sm:$0xff]  }
  0x67   : > { %v757_v8 = vmax.f32 %v1170_v1, %v756_v46  ;;  %v1193_v22 = vunpack.c.l.bf16 %v1867_v24  ;;  %v1194_v17 = vunpack.c.h.bf16 %v1867_v24 }
  0x68   : > { %v626_v48 = vadd.f32 %v1153_v4, %v625_v7  ;;  %v1252_v7 = vld [vmem:[%s1604_s4 + $0xf0] sm:$0xff]  }
  0x69   : > { %v759_v10 = vmax.f32 %v1173_v29, %v757_v8  ;;  %v1218_v24 = vunpack.c.h.bf16 %v1252_v7 }
  0x6a   : > { %v627_v20 = vadd.f32 %v1154_v30, %v626_v48  ;;  %v1247_v30 = vld [vmem:[%s1604_s4 + $0xc8] sm:$0xff]  }
  0x6b   : > { %v760_v6 = vmax.f32 %v1174_v31, %v759_v10  ;;  %v1197_v18 = vunpack.c.l.bf16 %v1247_v30  ;;  %v1198_v23 = vunpack.c.h.bf16 %v1247_v30 }
  0x6c   : > { %v628_v55 = vadd.f32 %v1157_v33, %v627_v20  ;;  %v1253_v20 = vld [vmem:[%s1604_s4 + $0xf8] sm:$0xff]  }
  0x6d   : > { %v761_v37 = vmax.f32 %v1177_v42, %v760_v6  ;;  %v1209_v6 = vunpack.c.l.bf16 %v1250_v49  ;;  %v1222_v30 = vunpack.c.h.bf16 %v1253_v20 }
  0x6e   : > { %v629_v4 = vadd.f32 %v1158_v45, %v628_v55 }
  0x6f   : > { %v763_v43 = vmax.f32 %v1178_v35, %v761_v37 }
  0x70   : > { %v630_v62 = vadd.f32 %v1161_v52, %v629_v4  ;;  %v1249_v52 = vld [vmem:[%s1604_s4 + $0xd8] sm:$0xff]   ;;  %v1221_v4 = vunpack.c.l.bf16 %v1253_v20 }
  0x71   : > { %v764_v47 = vmax.f32 %v1181_v50, %v763_v43  ;;  %v1206_v32 = vunpack.c.h.bf16 %v1249_v52 }
  0x72   : > { %v631_v33 = vadd.f32 %v1162_v59, %v630_v62  ;;  %v1205_v59 = vunpack.c.l.bf16 %v1249_v52 }
  0x73   : > { %v765_v51 = vmax.f32 %v1182_v16, %v764_v47 }
  0x74   : > { %v632_v28 = vadd.f32 %v1165_v63, %v631_v33 }
  0x75   : > { %v767_v53 = vmax.f32 %v1185_v58, %v765_v51 }
  0x76   : > { %v633_v3 = vadd.f32 %v1166_v14, %v632_v28  ;;  %v1251_v14 = vld [vmem:[%s1604_s4 + $0xe8] sm:$0xff]  }
  0x77   : > { %v768_v56 = vmax.f32 %v1186_v21, %v767_v53  ;;  %v1213_v43 = vunpack.c.l.bf16 %v1251_v14  ;;  %v1214_v15 = vunpack.c.h.bf16 %v1251_v14 }
  0x78   : > { %v634_v46 = vadd.f32 %v1169_v36, %v633_v3 }
  0x79   : > { %v769_v60 = vmax.f32 %v1189_v9, %v768_v56 }
  0x7a   : > { %v635_v8 = vadd.f32 %v1170_v1, %v634_v46 }
  0x7b   : > { %v771_v12 = vmax.f32 %v1190_v26, %v769_v60 }
  0x7c   : > { %v636_v10 = vadd.f32 %v1173_v29, %v635_v8  ;;  %v1217_v29 = vunpack.c.l.bf16 %v1252_v7 }
  0x7d   : > { %v772_v34 = vmax.f32 %v1193_v22, %v771_v12 }
  0x7e   : > { %v637_v11 = vadd.f32 %v1174_v31, %v636_v10 }
  0x7f   : > { %v773_v45 = vmax.f32 %v1194_v17, %v772_v34 }
  0x80   : > { %v638_v57 = vadd.f32 %v1177_v42, %v637_v11  ;;  %v534_v11 = vld [vmem:[#allocation2] sm:$0x1] }
  0x81   : > { %v775_v25 = vmax.f32 %v1197_v18, %v773_v45 }
  0x82   : > { %v639_v38 = vadd.f32 %v1178_v35, %v638_v57  ;;  %v831_v57 = vld [vmem:[%s1958_s1 + $0x48] sm:$0xff] }
  0x83   : > { %v776_v5 = vmax.f32 %v1198_v23, %v775_v25 }
  0x84   : > { %v640_v1 = vadd.f32 %v1181_v50, %v639_v38  ;;  %v830_v38 = vld [vmem:[%s1958_s1 + $0x40] sm:$0xff] }
  0x85   : > { %v777_v13 = vmax.f32 %v1201_v27, %v776_v5 }
  0x86   : > { %v641_v48 = vadd.f32 %v1182_v16, %v640_v1 }
  0x87   : > { %v779_v54 = vmax.f32 %v1202_v2, %v777_v13 }
  0x88   : > { %v642_v53 = vadd.f32 %v1185_v58, %v641_v48 }
  0x89   : > { %v780_v63 = vmax.f32 %v1205_v59, %v779_v54 }
  0x8a   : > { %v643_v55 = vadd.f32 %v1186_v21, %v642_v53 }
  0x8b   : > { %v781_v37 = vmax.f32 %v1206_v32, %v780_v63  ;;  %v832_v63 = vld [vmem:[%s1958_s1 + $0x50] sm:$0xff] }
  0x8c   : > { %v644_v42 = vadd.f32 %v1189_v9, %v643_v55  ;;  %1283 = vmatpush3.msra.mxu0 %v832_v63 }
  0x8d   : > { %v783_v36 = vmax.f32 %v1209_v6, %v781_v37  ;;  %1284 = vmatprep.subr.mxu0 %v1491_v0  ;;  %v822_v37 = vld [vmem:[%s1958_s1] sm:$0xff] }
  0x8e   : > { %v645_v35 = vadd.f32 %v1190_v26, %v644_v42  ;;  %1285 = vmatpush3.msra.mxu0 %v831_v57 }
  0x8f   : > { %v784_v47 = vmax.f32 %v1210_v61, %v783_v36  ;;  %1286 = vmatprep.subr.mxu0 %v1491_v0 }
  0x90   : > { %v646_v12 = vadd.f32 %v1193_v22, %v645_v35  ;;  %1287 = vmatpush3.msra.mxu0 %v830_v38 }
  0x91   : > { %v785_v51 = vmax.f32 %v1213_v43, %v784_v47 }
  0x92   : > { %v647_v50 = vadd.f32 %v1194_v17, %v646_v12 }
  0x93   : > { %v787_v31 = vmax.f32 %v1214_v15, %v785_v51 }
  0x94   : > { %v648_v16 = vadd.f32 %v1197_v18, %v647_v50  ;;  %v670_v18 = vld [vmem:[#allocation3] sm:$0x1] }
  0x95   : > { %v788_v56 = vmax.f32 %v1217_v29, %v787_v31 }
  0x96   : > { %v649_v28 = vadd.f32 %v1198_v23, %v648_v16 }
  0x97   : > { %v789_v60 = vmax.f32 %v1218_v24, %v788_v56 }
  0x98   : > { %v650_v45 = vadd.f32 %v1201_v27, %v649_v28 }
  0x99   : > { %v791_v62 = vmax.f32 %v1221_v4, %v789_v60 }
  0x9a   : > { %v651_v3 = vadd.f32 %v1202_v2, %v650_v45 }
  0x9b   : > { %v792_v33 = vmax.f32 %v1222_v30, %v791_v62 }
  0x9c   : > { %v652_v25 = vadd.f32 %v1205_v59, %v651_v3 }
  0x9d   : > { %v793_v34 = vmax.f32 %v1664_v39, %v792_v33 }
  0x9e   : > { %v653_v26 = vadd.f32 %v1206_v32, %v652_v25 }
  0x9f   : > { %v795_v19 = vmax.f32 %v1666_v40, %v793_v34 }
  0xa0   : > { %v654_v22 = vadd.f32 %v1209_v6, %v653_v26  ;;  %v823_v6 = vld [vmem:[%s1958_s1 + $0x8] sm:$0xff] }
  0xa1   : > { %v796_v58 = vmax.f32 %v1668_v41, %v795_v19  ;;  %1304 = vmatpush3.msra.mxu1 %v823_v6 }
  0xa2   : > { %v655_v17 = vadd.f32 %v1210_v61, %v654_v22  ;;  %1305 = vmatprep.subr.mxu1 %v1491_v0  ;;  %v985_v0 = vld [vmem:[%s1959_s2] sm:$0x1] }
  0xa3   : > { %v797_v21 = vmax.f32 %v1673_v44, %v796_v58  ;;  %1306 = vmatpush3.msra.mxu1 %v822_v37 }
  0xa4   : > { %v656_v39 = vadd.f32 %v1213_v43, %v655_v17 }
  0xa5   : > { %v798_v9 = vrot.slane %v797_v21, 4 }
  0xa6   : > { %v657_v40 = vadd.f32 %v1214_v15, %v656_v39 }
  0xa7   : > { %v799_v52 = vmax.f32 %v797_v21, %v798_v9 }
  0xa8   : > { %v658_v49 = vadd.f32 %v1217_v29, %v657_v40 }
  0xa9   : > { %v800_v46 = vrot.slane %v799_v52, 2 }
  0xaa   : > { %v659_v41 = vadd.f32 %v1218_v24, %v658_v49 }
  0xab   : > { %v801_v5 = vmax.f32 %v799_v52, %v800_v46 }
  0xac   : > { %v660_v27 = vadd.f32 %v1221_v4, %v659_v41 }
  0xad   : > { %v802_v8 = vrot.slane %v801_v5, 1 }
  0xae   : > { %v661_v44 = vadd.f32 %v1222_v30, %v660_v27 }
  0xaf   : > { %v803_v13 = vmax.f32 %v801_v5, %v802_v8 }
  0xb0   : > { %v662_v2 = vrot.slane %v661_v44, 4 }
  0xb1   : > { %v804_v23 = vmax.f32 %v670_v18, %v803_v13 }
  0xb2   : > { %v663_v10 = vadd.f32 %v662_v2, %v661_v44 }
  0xb3   : > { %805 = vst [vmem:[#allocation3] sm:$0x1] %v804_v23 }
  0xb4   : > { %v664_v59 = vrot.slane %v663_v10, 2 }
  0xb6   : > { %v665_v54 = vadd.f32 %v664_v59, %v663_v10 }
  0xb8   : > { %v666_v32 = vrot.slane %v665_v54, 1 }
  0xba   : > { %v667_v14 = vadd.f32 %v666_v32, %v665_v54  ;;  %v810_v43 = vld [vmem:[#allocation3] sm:$0x1] }
  0xbc   : > { %v668_v61 = vadd.f32 %v667_v14, %v534_v11 }
  0xbe   : > { %669 = vst [vmem:[#allocation2] sm:$0x1] %v668_v61 }
  0xc5   : > { %v809_v36 = vld [vmem:[#allocation2] sm:$0x1] }
  0xc6   : > { %812 = vrot.lane.b32.xlu0 %v809_v36, %s1494_s5 }
  0xca   : > { %817 = vrot.lane.b32.xlu0 %v810_v43, %s1494_s5 }
 0x138   : > { %v813_v7 = vpop.permute.xlu0 %812 }
 0x139   : > { %v815_v1 = vadd.f32 %v813_v7, %v809_v36 }
 0x13b   : > { %v821_v47 = vmul.f32 0.0009765625, %v815_v1 }
 0x13c   : > { %v818_v15 = vpop.permute.xlu0 %817 }
 0x13d   : > { %v820_v48 = vmax.f32 %v810_v43, %v818_v15  ;;  %1308 = vmatmul.mubr.msk.f32.vlgmr.msra.gmra.mxu1 %vm838_vm1, %v821_v47 }
 0x13f   : > { %1289 = vmatmul.mubr.msk.f32.vlgmr.msra.gmra.mxu0 %vm838_vm1, %v820_v48 }
 0x1fd   : > { %v981_v51 = vpop.f32.mrf.mxu1 }
 0x1ff   : > { %v908_v29 = vpop.f32.mrf.mxu0  ;;  %v1309_v20 = vpop.f32.mrf.mxu1 }
 0x200   : > { %v982_v53 = vadd.f32 %v981_v51, %v908_v29 }
 0x201   : > { %v1290_v31 = vpop.f32.mrf.mxu0 }
 0x202   : > { %v986_v24 = vadd.f32 %v985_v0, %v982_v53 }
 0x204   : > { %v987_v55 = vmax.f32 %v986_v24, 0.0 }
 0x206   : > { %989 = vst.msk [vmem:[%s203_s9] sm:$0x1] %vm988_vm2, %v987_v55 }
 0x207   : > { %1419 = shalt.err (!%p1416_p6)
}
 0x208   : > { %s1420_s29 = scalar_lea.hbm %s1001_s18, 16  ;;  %s1424_s24 = scalar_lea.hbm %s1960_s3, 32 }
 0x209   : > { %p1421_p7 = scmp.ne.s32.totalorder %s1001_s18, %s1420_s29  ;;  %p1425_p13 = scmp.lt.s32.totalorder %s1001_s18, %s1960_s3 }
 0x20a   : > { %p1426_p2 = scmp.lt.s32.totalorder %s1424_s24, %s1420_s29 }
 0x20b   : > { %p1422_p10 = pnand %p1421_p7, %p1567_p9 }
 0x20c   : > { %p1427_p8 = por %p1426_p2, %p1425_p13 }
 0x20d   : > { %p1423_p4 = pneg %p1422_p10 }
 0x20f   : > { %p1428_p12 = pnand %p1427_p8, %p1423_p4 }
 0x211   : > { %1431 = shalt.err (!%p1428_p12)
}
 0x212   : > { %1312 = dma.vmem_to_hbm [thread:$0]  (%p1567_p9), %s1004_s10, 16, %s1001_s18, %s991_s19  }
 0x213 PF: > { %s1015_s7 = sand.u32 1, %s1466_s12   ;;  %p1966_p0 = scmp.ge.s32.totalorder %s1486_s17, 2 }
 0x214   : > { %s1016_s8 = scalar_lea.sflag [#allocation6], %s1015_s7 }
 0x215   : > { %p1319_p1 = pnand %p1966_p0, %p1574_p11 }
 0x217   : > { %p1320_p3 = pneg %p1319_p1 }
 0x219   : > { %1461 = dma.done.wait (%p1320_p3), %s1016_s8, 16  }
 0x21a   : > { %1463 = vsyncadd (%p1320_p3), %s1016_s8, 4294967280  ;;  %s19_s17 = sadd.s32 1, %s1486_s17   ;;  %s1967_s12 = smov %s1470_s13 }
 0x21b   : > { %p16_p5 = scmp.ge.s32.totalorder %s19_s17, 4   ;;  %s1968_s13 = smov %s1474_s14 }
 0x21c   : > { %s1969_s14 = smov %s1572_s26  ;;  %s1970_s15 = smov %s1482_s16 }
 0x21d   : > { %s1971_s16 = smov %s1973_s20  ;;  %18 = sbr.rel (!%p16_p5) target bundleno = 6 (0x6), region = 85 }
 0x222   :  { %1020 = vsyncpa [#allocation5], 1 }
 0x223   :  { %1022 = vsyncpa [#allocation5 + $0x1], 1 }
 0x224   :  { %1023 = vsyncpa [#allocation6], 1 }
 0x225   :  { %1025 = vsyncpa [#allocation6 + $0x1], 1 }

</bundles_post_ra>
